<compile_context>
chip_gen: v7x
topology: tpu7x:2x2x1
jax: 0.10.0
libtpu: 0.0.40
codegen_flags: <defaults>
</compile_context>

<pallas_src>
import functools

import jax
import jax.numpy as jnp
from jax.experimental import pallas as pl
from jax.experimental.pallas import tpu as pltpu


# --------------------------------- kernels ----------------------------------

def _out_block_vpu_kernel(x_ref, w_ref, b_ref, o_ref):
    """Small-channel path: VPU broadcast-FMAs, weights/bias as SMEM scalars.

    x_ref: (1, C_in, t_r, 128)  VMEM
    w_ref: (C_out * C_in,)      SMEM f32, row-major [co, ci]
    b_ref: (C_out,)             SMEM f32
    o_ref: (1, C_out, t_r, 128) VMEM
    """
    c_in = x_ref.shape[1]
    c_out = o_ref.shape[1]
    for co in range(c_out):
        acc = x_ref[0, 0].astype(jnp.float32) * w_ref[co * c_in] + b_ref[co]
        for ci in range(1, c_in):
            acc = acc + x_ref[0, ci].astype(jnp.float32) * w_ref[co * c_in + ci]
        o_ref[0, co] = acc.astype(o_ref.dtype)


def _out_block_mxu_kernel(x_ref, w_ref, b_ref, o_ref):
    """Wide-channel path: channel matmul on the MXU, pixels lane-dense.

    x_ref: (1, C_in, t_hw)  VMEM
    w_ref: (C_out, C_in)    VMEM (grid-invariant index_map -> no per-step re-DMA)
    b_ref: (C_out, 1)       VMEM f32
    o_ref: (1, C_out, t_hw) VMEM
    """
    acc = jnp.dot(w_ref[...], x_ref[0], preferred_element_type=jnp.float32)
    o_ref[0] = (acc + b_ref[...]).astype(o_ref.dtype)


# ------------------------------ tile selection -------------------------------

_VMEM_TILE_BUDGET = 24 * 1024 * 1024  # double-buffered in+out tiles; v7x-safe


def _pixel_target(c_in, c_out, itemsize, requested):
    per_pixel = 2 * (c_in + c_out) * max(itemsize, 4)  # double-buffered, f32-ish
    cap = max(128, (_VMEM_TILE_BUDGET // per_pixel) // 128 * 128)
    return min(requested, cap)


def _pick_tile(extent, target, quantum):
    """Largest tile <= target that is a multiple of `quantum` and (preferably)
    divides `extent`; `extent` itself if it already fits (full-dim block)."""
    if extent <= target:
        return extent
    t = max(quantum, (target // quantum) * quantum)
    for cand in range(t, quantum - 1, -quantum):
        if extent % cand == 0:
            return cand
    return t  # no exact divisor: Pallas masks the ragged edge block


# --------------------------------- wrapper -----------------------------------

@functools.partial(jax.jit, static_argnames=("tile_pixels",))
def unet_out_block(x_nchw, weight, bias, *, tile_pixels=32768):
    """UnetOutBlock forward: 1x1 conv (stride 1) + bias.  NCHW in / NCHW out.

    x_nchw : (N, C_in, H, W)
    weight : (C_out, C_in)  -- squeezed 1x1 conv weight
    bias   : (C_out,)
    """
    N, C_in, H, W = x_nchw.shape
    C_out = weight.shape[0]
    HW = H * W
    itemsize = x_nchw.dtype.itemsize

    target_px = _pixel_target(C_in, C_out, itemsize, tile_pixels)
    use_vpu = (C_in * C_out) <= 1024  # tiny channel counts: MXU is ~empty

    cost = pl.CostEstimate(
        flops=2 * N * HW * C_in * C_out,
        transcendentals=0,
        bytes_accessed=(N * HW * (C_in + C_out)) * itemsize
        + weight.size * weight.dtype.itemsize
        + bias.size * bias.dtype.itemsize,
    )
    cparams = pltpu.CompilerParams(
        dimension_semantics=("parallel", "parallel"))

    if use_vpu:
        # View pixels as rows of 128 lanes -> dense (8,128) vreg tiles.
        R = pl.cdiv(HW, 128)
        HW_pad = R * 128
        x3 = x_nchw.reshape(N, C_in, HW)
        if HW_pad != HW:
            # TODO(synk): non-multiple-of-128 spatial size pays one pad copy;
            # typical UNet shapes (powers of two) never hit this branch.
            x3 = jnp.pad(x3, ((0, 0), (0, 0), (0, HW_pad - HW)))
        x4 = x3.reshape(N, C_in, R, 128)

        t_r = _pick_tile(R, max(8, target_px // 128), 8)
        grid = (N, pl.cdiv(R, t_r))

        out4 = pl.pallas_call(
            _out_block_vpu_kernel,
            out_shape=jax.ShapeDtypeStruct((N, C_out, R, 128), x_nchw.dtype),
            grid_spec=pltpu.PrefetchScalarGridSpec(
                num_scalar_prefetch=0,
                grid=grid,
                in_specs=[
                    pl.BlockSpec((1, C_in, t_r, 128),
                                 lambda n, j: (n, 0, j, 0)),
                    pl.BlockSpec(memory_space=pltpu.MemorySpace.SMEM),
                    pl.BlockSpec(memory_space=pltpu.MemorySpace.SMEM),
                ],
                out_specs=pl.BlockSpec((1, C_out, t_r, 128),
                                       lambda n, j: (n, 0, j, 0)),
            ),
            compiler_params=cparams,
            cost_estimate=cost,
        )(x4,
          weight.astype(jnp.float32).reshape(-1),
          bias.astype(jnp.float32))

        out = out4.reshape(N, C_out, HW_pad)
        if HW_pad != HW:
            out = out[:, :, :HW]
    else:
        x3 = x_nchw.reshape(N, C_in, HW)
        t_hw = _pick_tile(HW, target_px, 128)
        grid = (N, pl.cdiv(HW, t_hw))

        out = pl.pallas_call(
            _out_block_mxu_kernel,
            out_shape=jax.ShapeDtypeStruct((N, C_out, HW), x_nchw.dtype),
            grid_spec=pltpu.PrefetchScalarGridSpec(
                num_scalar_prefetch=0,
                grid=grid,
                in_specs=[
                    pl.BlockSpec((1, C_in, t_hw), lambda n, j: (n, 0, j)),
                    pl.BlockSpec((C_out, C_in), lambda n, j: (0, 0)),
                    pl.BlockSpec((C_out, 1), lambda n, j: (0, 0)),
                ],
                out_specs=pl.BlockSpec((1, C_out, t_hw),
                                       lambda n, j: (n, 0, j)),
            ),
            compiler_params=cparams,
            cost_estimate=cost,
        )(x3,
          weight.astype(x_nchw.dtype),
          bias.astype(jnp.float32).reshape(C_out, 1))

    return out.reshape(N, C_out, H, W)


# ----------------------------------- test ------------------------------------

if __name__ == "__main__":
    # Config consistent with UnetOutBlock(spatial_dims=2, in_channels=4, out_channels=3).
    N, C_in, H, W = 2, 4, 16, 16
    C_out = 3

    key = jax.random.PRNGKey(0)
    kx, kw, kb = jax.random.split(key, 3)
    x = jax.random.normal(kx, (N, C_in, H, W), dtype=jnp.float32)
    # Conv2d 1x1 weight is (C_out, C_in, 1, 1); keep the squeezed (C_out, C_in) form.
    weight = jax.random.normal(kw, (C_out, C_in), dtype=jnp.float32) / jnp.sqrt(C_in)
    bias = jax.random.normal(kb, (C_out,), dtype=jnp.float32) * 0.1

    out = jax.block_until_ready(unet_out_block(x, weight, bias))
    ref = jnp.einsum("nchw,oc->nohw", x, weight) + bias[None, :, None, None]
    assert out.shape == (N, C_out, H, W)
    assert jnp.allclose(out, ref, atol=1e-5, rtol=1e-5)

    # Wide-channel config exercises the MXU path (looser tol: MXU bf16 passes).
    N2, C2i, C2o, H2, W2 = 1, 64, 48, 8, 8
    k2 = jax.random.split(jax.random.PRNGKey(1), 3)
    x2 = jax.random.normal(k2[0], (N2, C2i, H2, W2), dtype=jnp.float32)
    w2 = jax.random.normal(k2[1], (C2o, C2i), dtype=jnp.float32) / jnp.sqrt(C2i)
    b2 = jax.random.normal(k2[2], (C2o,), dtype=jnp.float32) * 0.1
    out2 = jax.block_until_ready(unet_out_block(x2, w2, b2))
    ref2 = jnp.einsum("nchw,oc->nohw", x2, w2) + b2[None, :, None, None]
    assert out2.shape == (N2, C2o, H2, W2)
    assert jnp.allclose(out2, ref2, atol=2e-2, rtol=2e-2)

    print("KERNEL_OK")
</pallas_src>

<mosaic_0001>
module attributes {stable_mosaic.version = 11 : i64} {
  func.func @_out_block_vpu_kernel(%arg0: i32, %arg1: i32, %arg2: memref<1x4x2x128xf32, #tpu.memory_space<vmem>>, %arg3: memref<12xf32, #tpu.memory_space<smem>>, %arg4: memref<3xf32, #tpu.memory_space<smem>>, %arg5: memref<1x3x2x128xf32, #tpu.memory_space<vmem>>) attributes {dimension_semantics = [#tpu.dimension_semantics<parallel>, #tpu.dimension_semantics<parallel>], iteration_bounds = array<i64: 2, 1>, scalar_prefetch = 0 : i64, scratch_operands = 0 : i64, tpu.core_type = #tpu.core_type<tc>, window_params = [{transform_indices = @transform_0, window_bounds = array<i64: 1, 4, 2, 128>}, {transform_indices = @transform_1, window_bounds = array<i64: 12>}, {transform_indices = @transform_2, window_bounds = array<i64: 3>}, {transform_indices = @transform_3, window_bounds = array<i64: 1, 3, 2, 128>}]} {
    %c0 = arith.constant 0 : index
    %c0_0 = arith.constant 0 : index
    %c0_1 = arith.constant 0 : index
    %c0_2 = arith.constant 0 : index
    %0 = vector.load %arg2[%c0, %c0_0, %c0_1, %c0_2] : memref<1x4x2x128xf32, #tpu.memory_space<vmem>>, vector<1x1x2x128xf32>
    %1 = vector.shape_cast %0 : vector<1x1x2x128xf32> to vector<2x128xf32>
    %c0_3 = arith.constant 0 : index
    %2 = memref.load %arg3[%c0_3] : memref<12xf32, #tpu.memory_space<smem>>
    %3 = vector.broadcast %2 : f32 to vector<2x128xf32>
    %4 = arith.mulf %1, %3 : vector<2x128xf32>
    %c0_4 = arith.constant 0 : index
    %5 = memref.load %arg4[%c0_4] : memref<3xf32, #tpu.memory_space<smem>>
    %6 = vector.broadcast %5 : f32 to vector<2x128xf32>
    %7 = arith.addf %4, %6 : vector<2x128xf32>
    %c0_5 = arith.constant 0 : index
    %c1 = arith.constant 1 : index
    %c0_6 = arith.constant 0 : index
    %c0_7 = arith.constant 0 : index
    %8 = vector.load %arg2[%c0_5, %c1, %c0_6, %c0_7] : memref<1x4x2x128xf32, #tpu.memory_space<vmem>>, vector<1x1x2x128xf32>
    %9 = vector.shape_cast %8 : vector<1x1x2x128xf32> to vector<2x128xf32>
    %c1_8 = arith.constant 1 : index
    %10 = memref.load %arg3[%c1_8] : memref<12xf32, #tpu.memory_space<smem>>
    %11 = vector.broadcast %10 : f32 to vector<2x128xf32>
    %12 = arith.mulf %9, %11 : vector<2x128xf32>
    %13 = arith.addf %7, %12 : vector<2x128xf32>
    %c0_9 = arith.constant 0 : index
    %c2 = arith.constant 2 : index
    %c0_10 = arith.constant 0 : index
    %c0_11 = arith.constant 0 : index
    %14 = vector.load %arg2[%c0_9, %c2, %c0_10, %c0_11] : memref<1x4x2x128xf32, #tpu.memory_space<vmem>>, vector<1x1x2x128xf32>
    %15 = vector.shape_cast %14 : vector<1x1x2x128xf32> to vector<2x128xf32>
    %c2_12 = arith.constant 2 : index
    %16 = memref.load %arg3[%c2_12] : memref<12xf32, #tpu.memory_space<smem>>
    %17 = vector.broadcast %16 : f32 to vector<2x128xf32>
    %18 = arith.mulf %15, %17 : vector<2x128xf32>
    %19 = arith.addf %13, %18 : vector<2x128xf32>
    %c0_13 = arith.constant 0 : index
    %c3 = arith.constant 3 : index
    %c0_14 = arith.constant 0 : index
    %c0_15 = arith.constant 0 : index
    %20 = vector.load %arg2[%c0_13, %c3, %c0_14, %c0_15] : memref<1x4x2x128xf32, #tpu.memory_space<vmem>>, vector<1x1x2x128xf32>
    %21 = vector.shape_cast %20 : vector<1x1x2x128xf32> to vector<2x128xf32>
    %c3_16 = arith.constant 3 : index
    %22 = memref.load %arg3[%c3_16] : memref<12xf32, #tpu.memory_space<smem>>
    %23 = vector.broadcast %22 : f32 to vector<2x128xf32>
    %24 = arith.mulf %21, %23 : vector<2x128xf32>
    %25 = arith.addf %19, %24 : vector<2x128xf32>
    %c0_17 = arith.constant 0 : index
    %c0_18 = arith.constant 0 : index
    %c0_19 = arith.constant 0 : index
    %c0_20 = arith.constant 0 : index
    %26 = vector.load %arg5[%c0_17, %c0_18, %c0_19, %c0_20] : memref<1x3x2x128xf32, #tpu.memory_space<vmem>>, vector<1x1x2x128xf32>
    %27 = vector.shape_cast %26 : vector<1x1x2x128xf32> to vector<2x128xf32>
    %28 = vector.shape_cast %25 : vector<2x128xf32> to vector<1x1x2x128xf32>
    tpu.vector_store %arg5[%c0_17, %c0_18, %c0_19, %c0_20], %28 {strides = array<i32>} : memref<1x3x2x128xf32, #tpu.memory_space<vmem>>, vector<1x1x2x128xf32>,
    %c0_21 = arith.constant 0 : index
    %c0_22 = arith.constant 0 : index
    %c0_23 = arith.constant 0 : index
    %c0_24 = arith.constant 0 : index
    %29 = vector.load %arg2[%c0_21, %c0_22, %c0_23, %c0_24] : memref<1x4x2x128xf32, #tpu.memory_space<vmem>>, vector<1x1x2x128xf32>
    %30 = vector.shape_cast %29 : vector<1x1x2x128xf32> to vector<2x128xf32>
    %c4 = arith.constant 4 : index
    %31 = memref.load %arg3[%c4] : memref<12xf32, #tpu.memory_space<smem>>
    %32 = vector.broadcast %31 : f32 to vector<2x128xf32>
    %33 = arith.mulf %30, %32 : vector<2x128xf32>
    %c1_25 = arith.constant 1 : index
    %34 = memref.load %arg4[%c1_25] : memref<3xf32, #tpu.memory_space<smem>>
    %35 = vector.broadcast %34 : f32 to vector<2x128xf32>
    %36 = arith.addf %33, %35 : vector<2x128xf32>
    %c0_26 = arith.constant 0 : index
    %c1_27 = arith.constant 1 : index
    %c0_28 = arith.constant 0 : index
    %c0_29 = arith.constant 0 : index
    %37 = vector.load %arg2[%c0_26, %c1_27, %c0_28, %c0_29] : memref<1x4x2x128xf32, #tpu.memory_space<vmem>>, vector<1x1x2x128xf32>
    %38 = vector.shape_cast %37 : vector<1x1x2x128xf32> to vector<2x128xf32>
    %c5 = arith.constant 5 : index
    %39 = memref.load %arg3[%c5] : memref<12xf32, #tpu.memory_space<smem>>
    %40 = vector.broadcast %39 : f32 to vector<2x128xf32>
    %41 = arith.mulf %38, %40 : vector<2x128xf32>
    %42 = arith.addf %36, %41 : vector<2x128xf32>
    %c0_30 = arith.constant 0 : index
    %c2_31 = arith.constant 2 : index
    %c0_32 = arith.constant 0 : index
    %c0_33 = arith.constant 0 : index
    %43 = vector.load %arg2[%c0_30, %c2_31, %c0_32, %c0_33] : memref<1x4x2x128xf32, #tpu.memory_space<vmem>>, vector<1x1x2x128xf32>
    %44 = vector.shape_cast %43 : vector<1x1x2x128xf32> to vector<2x128xf32>
    %c6 = arith.constant 6 : index
    %45 = memref.load %arg3[%c6] : memref<12xf32, #tpu.memory_space<smem>>
    %46 = vector.broadcast %45 : f32 to vector<2x128xf32>
    %47 = arith.mulf %44, %46 : vector<2x128xf32>
    %48 = arith.addf %42, %47 : vector<2x128xf32>
    %c0_34 = arith.constant 0 : index
    %c3_35 = arith.constant 3 : index
    %c0_36 = arith.constant 0 : index
    %c0_37 = arith.constant 0 : index
    %49 = vector.load %arg2[%c0_34, %c3_35, %c0_36, %c0_37] : memref<1x4x2x128xf32, #tpu.memory_space<vmem>>, vector<1x1x2x128xf32>
    %50 = vector.shape_cast %49 : vector<1x1x2x128xf32> to vector<2x128xf32>
    %c7 = arith.constant 7 : index
    %51 = memref.load %arg3[%c7] : memref<12xf32, #tpu.memory_space<smem>>
    %52 = vector.broadcast %51 : f32 to vector<2x128xf32>
    %53 = arith.mulf %50, %52 : vector<2x128xf32>
    %54 = arith.addf %48, %53 : vector<2x128xf32>
    %c0_38 = arith.constant 0 : index
    %c1_39 = arith.constant 1 : index
    %c0_40 = arith.constant 0 : index
    %c0_41 = arith.constant 0 : index
    %55 = vector.load %arg5[%c0_38, %c1_39, %c0_40, %c0_41] : memref<1x3x2x128xf32, #tpu.memory_space<vmem>>, vector<1x1x2x128xf32>
    %56 = vector.shape_cast %55 : vector<1x1x2x128xf32> to vector<2x128xf32>
    %57 = vector.shape_cast %54 : vector<2x128xf32> to vector<1x1x2x128xf32>
    tpu.vector_store %arg5[%c0_38, %c1_39, %c0_40, %c0_41], %57 {strides = array<i32>} : memref<1x3x2x128xf32, #tpu.memory_space<vmem>>, vector<1x1x2x128xf32>,
    %c0_42 = arith.constant 0 : index
    %c0_43 = arith.constant 0 : index
    %c0_44 = arith.constant 0 : index
    %c0_45 = arith.constant 0 : index
    %58 = vector.load %arg2[%c0_42, %c0_43, %c0_44, %c0_45] : memref<1x4x2x128xf32, #tpu.memory_space<vmem>>, vector<1x1x2x128xf32>
    %59 = vector.shape_cast %58 : vector<1x1x2x128xf32> to vector<2x128xf32>
    %c8 = arith.constant 8 : index
    %60 = memref.load %arg3[%c8] : memref<12xf32, #tpu.memory_space<smem>>
    %61 = vector.broadcast %60 : f32 to vector<2x128xf32>
    %62 = arith.mulf %59, %61 : vector<2x128xf32>
    %c2_46 = arith.constant 2 : index
    %63 = memref.load %arg4[%c2_46] : memref<3xf32, #tpu.memory_space<smem>>
    %64 = vector.broadcast %63 : f32 to vector<2x128xf32>
    %65 = arith.addf %62, %64 : vector<2x128xf32>
    %c0_47 = arith.constant 0 : index
    %c1_48 = arith.constant 1 : index
    %c0_49 = arith.constant 0 : index
    %c0_50 = arith.constant 0 : index
    %66 = vector.load %arg2[%c0_47, %c1_48, %c0_49, %c0_50] : memref<1x4x2x128xf32, #tpu.memory_space<vmem>>, vector<1x1x2x128xf32>
    %67 = vector.shape_cast %66 : vector<1x1x2x128xf32> to vector<2x128xf32>
    %c9 = arith.constant 9 : index
    %68 = memref.load %arg3[%c9] : memref<12xf32, #tpu.memory_space<smem>>
    %69 = vector.broadcast %68 : f32 to vector<2x128xf32>
    %70 = arith.mulf %67, %69 : vector<2x128xf32>
    %71 = arith.addf %65, %70 : vector<2x128xf32>
    %c0_51 = arith.constant 0 : index
    %c2_52 = arith.constant 2 : index
    %c0_53 = arith.constant 0 : index
    %c0_54 = arith.constant 0 : index
    %72 = vector.load %arg2[%c0_51, %c2_52, %c0_53, %c0_54] : memref<1x4x2x128xf32, #tpu.memory_space<vmem>>, vector<1x1x2x128xf32>
    %73 = vector.shape_cast %72 : vector<1x1x2x128xf32> to vector<2x128xf32>
    %c10 = arith.constant 10 : index
    %74 = memref.load %arg3[%c10] : memref<12xf32, #tpu.memory_space<smem>>
    %75 = vector.broadcast %74 : f32 to vector<2x128xf32>
    %76 = arith.mulf %73, %75 : vector<2x128xf32>
    %77 = arith.addf %71, %76 : vector<2x128xf32>
    %c0_55 = arith.constant 0 : index
    %c3_56 = arith.constant 3 : index
    %c0_57 = arith.constant 0 : index
    %c0_58 = arith.constant 0 : index
    %78 = vector.load %arg2[%c0_55, %c3_56, %c0_57, %c0_58] : memref<1x4x2x128xf32, #tpu.memory_space<vmem>>, vector<1x1x2x128xf32>
    %79 = vector.shape_cast %78 : vector<1x1x2x128xf32> to vector<2x128xf32>
    %c11 = arith.constant 11 : index
    %80 = memref.load %arg3[%c11] : memref<12xf32, #tpu.memory_space<smem>>
    %81 = vector.broadcast %80 : f32 to vector<2x128xf32>
    %82 = arith.mulf %79, %81 : vector<2x128xf32>
    %83 = arith.addf %77, %82 : vector<2x128xf32>
    %c0_59 = arith.constant 0 : index
    %c2_60 = arith.constant 2 : index
    %c0_61 = arith.constant 0 : index
    %c0_62 = arith.constant 0 : index
    %84 = vector.load %arg5[%c0_59, %c2_60, %c0_61, %c0_62] : memref<1x3x2x128xf32, #tpu.memory_space<vmem>>, vector<1x1x2x128xf32>
    %85 = vector.shape_cast %84 : vector<1x1x2x128xf32> to vector<2x128xf32>
    %86 = vector.shape_cast %83 : vector<2x128xf32> to vector<1x1x2x128xf32>
    tpu.vector_store %arg5[%c0_59, %c2_60, %c0_61, %c0_62], %86 {strides = array<i32>} : memref<1x3x2x128xf32, #tpu.memory_space<vmem>>, vector<1x1x2x128xf32>,
    return
  }
  func.func @transform_0(%arg0: i32, %arg1: i32) -> (i32, i32, i32, i32) {
    %c0_i32 = arith.constant 0 : i32
    %c0_i32_0 = arith.constant 0 : i32
    %c0_i32_1 = arith.constant 0 : i32
    return %arg0, %c0_i32, %arg1, %c0_i32_0 : i32, i32, i32, i32
  }
  func.func @transform_1(%arg0: i32, %arg1: i32) -> i32 {
    %c0_i32 = arith.constant 0 : i32
    %c0_i32_0 = arith.constant 0 : i32
    return %c0_i32 : i32
  }
  func.func @transform_2(%arg0: i32, %arg1: i32) -> i32 {
    %c0_i32 = arith.constant 0 : i32
    %c0_i32_0 = arith.constant 0 : i32
    return %c0_i32 : i32
  }
  func.func @transform_3(%arg0: i32, %arg1: i32) -> (i32, i32, i32, i32) {
    %c0_i32 = arith.constant 0 : i32
    %c0_i32_0 = arith.constant 0 : i32
    %c0_i32_1 = arith.constant 0 : i32
    return %arg0, %c0_i32, %arg1, %c0_i32_0 : i32, i32, i32, i32
  }
}

</mosaic_0001>

<bundles_post_ra>
// kernel: unet_out_block.1
= control target key start
LH: loop header
LB: loop body
LE: loop exit
PB: predicated region body
PF: predicated region fallthrough
CT: control target
= control target key end

     0   :  { %8 = vsyncpa [#allocation3], 0  ;;  %s686_s0 = inlined_call_operand.vmem [shape: f32[2,4,2,128], index: 0, kind: input, shape index: {}]   ;;  %s687_s1 = inlined_call_operand.vmem [shape: f32[12], index: 1, kind: input, shape index: {}]   ;;  %s688_s2 = inlined_call_operand.vmem [shape: f32[3], index: 2, kind: input, shape index: {}]   ;;  %s689_s3 = inlined_call_operand.vmem [shape: f32[2,3,2,128], index: 3, kind: output, shape index: {}]  }
   0x1   :  { %9 = vsyncpa [#allocation5], 0  ;;  %s578_s12 = smov 0   ;;  %s580_s13 = smov 0  }
   0x2   :  { %s582_s14 = smov 0  }
   0x3 LB: > { %s409_s15 = sadd.s32 4294967295, %s554_s14   ;;  %s27_s16 = sadd.s32 1, %s550_s13  ;;  %s554_s14 = sphi %s582_s14, %s15_s14   ;;  %s550_s13 = sphi %s580_s13, %s699_s13   ;;  %s546_s12 = sphi %s578_s12, %s698_s12  }
   0x4   : > { %p29_p0 = scmp.ge.s32.totalorder %s27_s16, 2  ;;  %p411_p1 = scmp.ge.s32.totalorder %s554_s14, 1 }
   0x5   : > { %p130_p2 = scmp.lt.s32.totalorder %s554_s14, 3  ;;  %p603_p4 = scmp.eq.s32.totalorder %s409_s15, 0 }
   0x6   : > { %s701_s16 = smov (%p29_p0, %s27_s16), 0  ;;  %s143_s21 = sshll.u32 %s687_s1, 4  ;;  %s144_s21 = int_to_ptr.vmem [resolvable:$true] %s143_s21 }
   0x7   : > { %p599_p3 = pnand %p411_p1, %p130_p2  ;;  %s154_s24 = sshll.u32 %s688_s2, 4  ;;  %s155_s24 = int_to_ptr.vmem [resolvable:$true] %s154_s24 }
   0x8   : > { %s694_s18 = scalar_select %p603_p4, 1, 0 }
   0x9   : > { %s693_s17 = scalar_select %p599_p3, 1, 0 }
   0xa   : > { %p457_p5 = pneg %p599_p3  ;;  %s494_s26 = scalar_lea.vmem %s144_s21, 16 }
   0xb   : > { %p495_p7 = scmp.ne.s32.totalorder %s144_s21, %s494_s26  ;;  %p502_p11 = scmp.lt.s32.totalorder %s144_s21, %s144_s21 }
   0xc   : > { %p617_p6 = pnand %p603_p4, %p457_p5  ;;  %p503_p12 = scmp.lt.s32.totalorder %s494_s26, %s494_s26 }
   0xe   : > { %p496_p8 = pneg %p617_p6  ;;  %p504_p13 = por %p503_p12, %p502_p11 }
  0x10   : > { %p497_p9 = pnand %p496_p8, %p495_p7 }
  0x12   : > { %p498_p10 = pneg %p497_p9 }
  0x14   : > { %p505_p0 = pnand %p504_p13, %p498_p10 }
  0x16   : > { %508 = shalt.err (!%p505_p0)
}
  0x17   : > { %s556_s27 = smov [#allocation2]   ;;  %s509_s28 = scalar_lea.vmem %s155_s24, 16 }
  0x18   : > { %460 = dma.vmem_to_smem (!%p617_p6), %s144_s21, 16, %s556_s27, [#allocation3]  }
  0x19   : > { %p510_p1 = scmp.ne.s32.totalorder %s155_s24, %s509_s28  ;;  %p517_p4 = scmp.lt.s32.totalorder %s155_s24, %s155_s24 }
  0x1a   : > { %p518_p3 = scmp.lt.s32.totalorder %s509_s28, %s509_s28 }
  0x1b   : > { %p512_p2 = pnand %p510_p1, %p496_p8 }
  0x1c   : > { %p519_p7 = por %p518_p3, %p517_p4 }
  0x1d   : > { %p513_p5 = pneg %p512_p2 }
  0x1f   : > { %p520_p9 = pnand %p519_p7, %p513_p5 }
  0x21   : > { %523 = shalt.err (!%p520_p9)
}
  0x22   : > { %s557_s29 = smov [#allocation4]   ;;  %p696_p10 = scmp.ne.s32.totalorder %s693_s17, 0 }
  0x23   : > { %463 = dma.vmem_to_smem (!%p617_p6), %s155_s24, 16, %s557_s29, [#allocation5]  }
  0x24   : > { %178 = sbr.rel (%p696_p10) target bundleno = 74 (0x4a), region = 32  ;;  %p697_p11 = scmp.ne.s32.totalorder (!%p696_p10), %s694_s18, 0 }
  0x2b   : > { %537 = dma.done.wait (%p697_p11), [#allocation3], 16  }
  0x2c   : > { %539 = vsyncadd (%p697_p11), [#allocation3], 4294967280 }
  0x2d   : > { %541 = dma.done.wait (%p697_p11), [#allocation5], 16  }
  0x2e   : > { %543 = vsyncadd (%p697_p11), [#allocation5], 4294967280 }
  0x2f   : > { %188 = sfence }
  0x30   : > { %p213_p3 = scmp.lt.s32.totalorder %s546_s12, 1  ;;  %s230_s30 = sld [smem:[#allocation2]] }
  0x31   : > { %s233_s4 = sld [smem:[#allocation4]]  ;;  %s422_s5 = sld [smem:[#allocation2 + $0x1]] }
  0x32   : > { %s703_s12 = smov (!%p213_p3, %s546_s12), 1  ;;  %s424_s6 = sld [smem:[#allocation2 + $0x2]] }
  0x33   : > { %s426_s7 = sld [smem:[#allocation2 + $0x3]]  ;;  %s447_s8 = sshll.u32 %s703_s12, 3 }
  0x34   : > { %s645_s11 = scalar_lea.vmem %s686_s0, %s447_s8  ;;  %s427_s15 = sld [smem:[#allocation2 + $0x4]] }
  0x35   : > { %v229_v0 = vld [vmem:[%s645_s11] sm:$0x3]  ;;  %v421_v2 = vld [vmem:[%s645_s11 + $0x2] sm:$0x3]  ;;  %v423_v6 = vld [vmem:[%s645_s11 + $0x4] sm:$0x3] }
  0x36   : > { %v231_v1 = vstv %s230_s30  ;;  %s428_s17 = sld [smem:[#allocation4 + $0x1]]  ;;  %s448_s18 = smul.u32 6, %s703_s12  ;;  %v425_v8 = vld [vmem:[%s645_s11 + $0x6] sm:$0x3]  ;;  %v255_v12 = vld [vmem:[%s645_s11] sm:$0x3] }
  0x37   : > { %v232_v3 = vmul.f32 %v231_v1, %v229_v0  ;;  %v234_v4 = vstv %s233_s4  ;;  %v239_v5 = vstv %s422_s5  ;;  %s430_s19 = sld [smem:[#allocation2 + $0x5]]  ;;  %s432_s20 = sld [smem:[#allocation2 + $0x6]]  ;;  %v429_v18 = vld [vmem:[%s645_s11 + $0x2] sm:$0x3]  ;;  %v431_v21 = vld [vmem:[%s645_s11 + $0x4] sm:$0x3] }
  0x38   : > { %v240_v7 = vmul.f32 %v421_v2, %v239_v5  ;;  %v245_v10 = vstv %s424_s6  ;;  %s653_s21 = sld [smem:[#allocation2 + $0x7]]  ;;  %s436_s22 = sld [smem:[#allocation2 + $0x8]]  ;;  %v433_v24 = vld [vmem:[%s645_s11 + $0x6] sm:$0x3]  ;;  %v279_v25 = vld [vmem:[%s645_s11] sm:$0x3] }
  0x39   : > { %v235_v9 = vadd.f32 %v234_v4, %v232_v3  ;;  %v251_v11 = vstv %s426_s7  ;;  %v246_v13 = vmul.f32 %v423_v6, %v245_v10  ;;  %s655_s23 = sld [smem:[#allocation4 + $0x2]]  ;;  %s439_s12 = sld [smem:[#allocation2 + $0x9]]  ;;  %v438_v30 = vld [vmem:[%s645_s11 + $0x2] sm:$0x3]  ;;  %v440_v34 = vld [vmem:[%s645_s11 + $0x4] sm:$0x3] }
  0x3a   : > { %v252_v15 = vmul.f32 %v425_v8, %v251_v11  ;;  %v257_v16 = vstv %s427_s15  ;;  %s441_s24 = sld [smem:[#allocation2 + $0xa]]  ;;  %s658_s25 = sld [smem:[#allocation2 + $0xb]]  ;;  %v442_v41 = vld [vmem:[%s645_s11 + $0x6] sm:$0x3] }
  0x3b   : > { %v241_v14 = vadd.f32 %v240_v7, %v235_v9  ;;  %v258_v17 = vmul.f32 %v257_v16, %v255_v12  ;;  %s664_s28 = scalar_lea.vmem %s689_s3, %s448_s18 }
  0x3c   : > { %v260_v20 = vstv %s428_s17 }
  0x3d   : > { %v247_v19 = vadd.f32 %v246_v13, %v241_v14  ;;  %v261_v22 = vadd.f32 %v260_v20, %v258_v17  ;;  %v264_v23 = vstv %s430_s19  ;;  %v269_v28 = vstv %s432_s20 }
  0x3e   : > { %v265_v27 = vmul.f32 %v429_v18, %v264_v23  ;;  %v274_v29 = vstv %s653_s21  ;;  %v270_v31 = vmul.f32 %v431_v21, %v269_v28  ;;  %v281_v32 = vstv %s436_s22 }
  0x3f   : > { %v253_v26 = vadd.f32 %v252_v15, %v247_v19  ;;  %v284_v33 = vstv %s655_s23  ;;  %v275_v36 = vmul.f32 %v433_v24, %v274_v29  ;;  %v282_v37 = vmul.f32 %v281_v32, %v279_v25 }
  0x40   : > { %v266_v35 = vadd.f32 %v265_v27, %v261_v22  ;;  %v288_v38 = vstv %s439_s12  ;;  %v293_v40 = vstv %s441_s24  ;;  %v298_v42 = vstv %s658_s25 }
  0x41   : > { %254 = vst [vmem:[%s664_s28] sm:$0x3] %v253_v26  ;;  %v289_v39 = vmul.f32 %v438_v30, %v288_v38  ;;  %v285_v44 = vadd.f32 %v284_v33, %v282_v37  ;;  %v294_v45 = vmul.f32 %v440_v34, %v293_v40  ;;  %v299_v48 = vmul.f32 %v442_v41, %v298_v42 }
  0x42   : > { %v271_v43 = vadd.f32 %v270_v31, %v266_v35 }
  0x43   : > { %v290_v47 = vadd.f32 %v289_v39, %v285_v44 }
  0x44   : > { %v276_v46 = vadd.f32 %v275_v36, %v271_v43 }
  0x45   : > { %v295_v49 = vadd.f32 %v294_v45, %v290_v47 }
  0x46   : > { %435 = vst [vmem:[%s664_s28 + $0x2] sm:$0x3] %v276_v46 }
  0x47   : > { %v300_v50 = vadd.f32 %v299_v48, %v295_v49 }
  0x49   : > { %444 = vst [vmem:[%s664_s28 + $0x4] sm:$0x3] %v300_v50 }
  0x4a PF: > { %s15_s14 = sadd.s32 1, %s554_s14   ;;  %s698_s12 = smov %s550_s13 }
  0x4b   : > { %p12_p4 = scmp.ge.s32.totalorder %s15_s14, 4   ;;  %s699_s13 = smov %s701_s16 }
  0x4d   :  { %14 = sbr.rel (!%p12_p4) target bundleno = 3 (0x3), region = 76 }
  0x54   :  { %330 = vsyncpa [#allocation3], 1 }
  0x55   :  { %332 = vsyncpa [#allocation3 + $0x1], 1 }
  0x56   :  { %333 = vsyncpa [#allocation5], 1 }

</bundles_post_ra>
